<compile_context>
chip_gen: v6e
topology: v6e:2x2x1
jax: 0.10.0
libtpu: 0.0.40
codegen_flags: <defaults>
</compile_context>

<pallas_src>
import functools

import jax
import jax.numpy as jnp
import numpy as np
from jax import lax
from jax.experimental import pallas as pl
from jax.experimental.pallas import tpu as pltpu


# ---------------------------------------------------------------------------
# Kernel
# ---------------------------------------------------------------------------
def fm_kernel(idx_ref, val_ref, table_ref, bias_ref, y_ref, *, F, E, V, TB):
    # idx_ref  : (F, TB)   int32  VMEM  feature indices (samples on lanes)
    # val_ref  : (F, TB)   f32    VMEM  feature values
    # table_ref: (E+1, V)  f32    VMEM  rows 0..E-1 = embedding dims, row E = w1
    # bias_ref : (1,)      f32    SMEM  global bias
    # y_ref    : (1, TB)   f32    VMEM  lane-dense output block
    E1 = E + 1

    table = table_ref[...]                                   # (E1, V)
    idx = idx_ref[...]                                       # (F, TB) int32
    val = val_ref[...]                                       # (F, TB) f32

    # Hoisted loop-invariant iota (JAX does not CSE broadcast_in_dim).
    sub_iota = lax.broadcasted_iota(jnp.int32, (V, TB), 0)   # (V, TB)

    s = jnp.zeros((E1, TB), jnp.float32)                     # sum_f  v * row
    q = jnp.zeros((E1, TB), jnp.float32)                     # sum_f (v * row)^2

    # F is small and static: fully unrolled at trace time.
    for f in range(F):
        onehot = (sub_iota == idx[f:f + 1, :]).astype(jnp.float32)        # (V, TB)
        rows = jnp.dot(table, onehot, preferred_element_type=jnp.float32)  # (E1, TB)
        xv = rows * val[f:f + 1, :]                                        # (E1, TB)
        s = s + xv
        q = q + xv * xv

    # Rows < E: FM bi-interaction 0.5 * ((sum_f xv)^2 - sum_f xv^2), summed
    # over the embedding dimension.  Row E: first-order term sum_f v * w1.
    s_emb = s[:E, :]                                          # (E, TB)
    q_emb = q[:E, :]                                          # (E, TB)
    y_second = 0.5 * jnp.sum(s_emb * s_emb - q_emb, axis=0, keepdims=True)  # (1, TB)
    y_first = s[E:E1, :]                                      # (1, TB)

    y = bias_ref[0] + y_first + y_second                      # (1, TB)
    # TODO(synk): OutputLayer(1, 'binary') assumed to be a plain Sigmoid.
    y_ref[...] = jax.nn.sigmoid(y)


# ---------------------------------------------------------------------------
# Wrapper
# ---------------------------------------------------------------------------
def fm_forward(feat_index, feat_value, emb_table, w1_table, bias, *, tile_b=128):
    """FM forward. feat_index/feat_value: (B, F). Returns (B,) float32."""
    B, F = feat_index.shape
    V, E = emb_table.shape
    E1 = E + 1

    # Batch tile: always a multiple of 128 so output blocks are lane-dense
    # (unmasked vst) and vregs are fully used.
    TB = max(128, (int(tile_b) // 128) * 128)
    B_pad = ((B + TB - 1) // TB) * TB
    pad = B_pad - B
    if pad:
        feat_index = jnp.concatenate(
            [feat_index, jnp.zeros((pad, F), feat_index.dtype)], axis=0)
        feat_value = jnp.concatenate(
            [feat_value, jnp.zeros((pad, F), feat_value.dtype)], axis=0)

    # Field-major layout: samples ride the lane axis inside the kernel.
    idx_t = feat_index.astype(jnp.int32).T                    # (F, B_pad)
    val_t = feat_value.astype(jnp.float32).T                  # (F, B_pad)

    # Combined, transposed table: (E+1, V); the w1 column becomes an extra
    # SUBLANE row, so it does not disturb lane alignment for any E.
    table_t = jnp.concatenate(
        [emb_table.astype(jnp.float32),
         w1_table.astype(jnp.float32).reshape(V, 1)], axis=1).T   # (E1, V)
    bias1 = bias.reshape(1).astype(jnp.float32)

    grid = (B_pad // TB,)
    kernel = functools.partial(fm_kernel, F=F, E=E, V=V, TB=TB)

    compiler_kwargs = dict(dimension_semantics=("parallel",))
    table_bytes = V * E1 * 4
    if table_bytes > (24 << 20):
        # Keep the resident table under an explicit scoped-VMEM budget.
        # TODO(synk): beyond ~40-50 MiB (esp. v7x 64 MiB VMEM) use bf16 storage
        # or a pl.ANY + manual DMA-gather path instead of a resident table.
        compiler_kwargs["vmem_limit_bytes"] = int(table_bytes + (16 << 20))

    cost = pl.CostEstimate(
        flops=int(B_pad * F * (2 * E1 * V + 6 * E1)),
        transcendentals=int(B_pad),
        bytes_accessed=int(idx_t.size * 4 + val_t.size * 4
                           + V * E1 * 4 + B_pad * 4),
    )

    y = pl.pallas_call(
        kernel,
        out_shape=jax.ShapeDtypeStruct((1, B_pad), jnp.float32),
        grid=grid,
        in_specs=[
            pl.BlockSpec((F, TB), lambda i: (0, i)),           # indices (VMEM)
            pl.BlockSpec((F, TB), lambda i: (0, i)),           # values  (VMEM)
            pl.BlockSpec((E1, V), lambda i: (0, 0)),           # table, resident
            pl.BlockSpec(memory_space=pltpu.MemorySpace.SMEM),  # bias scalar
        ],
        out_specs=pl.BlockSpec((1, TB), lambda i: (0, i)),     # lane-dense out
        compiler_params=pltpu.CompilerParams(**compiler_kwargs),
        cost_estimate=cost,
    )(idx_t, val_t, table_t, bias1)
    return y[0, :B]


# ---------------------------------------------------------------------------
# Pure-JAX reference mirroring the PyTorch forward exactly.
# ---------------------------------------------------------------------------
def fm_reference(feat_index, feat_value, emb_table, w1_table, bias):
    fv = feat_value[..., None]                                  # (B, F, 1)
    fow = w1_table[feat_index]                                  # (B, F, 1)
    y_first = jnp.sum((fv * fow)[..., 0], axis=1)               # (B,)
    emb = emb_table[feat_index]                                 # (B, F, E)
    xv = emb * fv                                               # (B, F, E)
    bi = jnp.square(jnp.sum(xv, axis=1)) - jnp.sum(jnp.square(xv), axis=1)
    y_second = jnp.sum(0.5 * bi, axis=1)                        # (B,)
    return jax.nn.sigmoid(bias[0] + y_first + y_second)


if __name__ == "__main__":
    B, F = 2, 8                     # batch, feature fields per sample
    feature_size = 32               # V
    embedding_size = 5              # E

    key = jax.random.PRNGKey(0)
    k_emb, k_w1, k_bias, k_idx, k_val = jax.random.split(key, 5)

    # xavier_uniform_ bounds as in the PyTorch module
    b_emb = float(np.sqrt(6.0 / (feature_size + embedding_size)))
    emb_table = jax.random.uniform(k_emb, (feature_size, embedding_size),
                                   jnp.float32, -b_emb, b_emb)
    b_w1 = float(np.sqrt(6.0 / (feature_size + 1)))
    w1_table = jax.random.uniform(k_w1, (feature_size, 1), jnp.float32, -b_w1, b_w1)
    bias = jax.random.normal(k_bias, (1,), jnp.float32)

    feat_index = jax.random.randint(k_idx, (B, F), 0, feature_size, jnp.int32)
    feat_value = jax.random.normal(k_val, (B, F), jnp.float32)

    y = jax.block_until_ready(
        fm_forward(feat_index, feat_value, emb_table, w1_table, bias))
    y_ref = fm_reference(feat_index, feat_value, emb_table, w1_table, bias)
    np.testing.assert_allclose(np.asarray(y), np.asarray(y_ref),
                               rtol=1e-5, atol=1e-5)
    print("KERNEL_OK")
</pallas_src>

<mosaic_0001>
module attributes {stable_mosaic.version = 11 : i64} {
  func.func @fm_kernel(%arg0: i32, %arg1: memref<8x128xi32, #tpu.memory_space<vmem>>, %arg2: memref<8x128xf32, #tpu.memory_space<vmem>>, %arg3: memref<6x32xf32, #tpu.memory_space<vmem>>, %arg4: memref<1xf32, #tpu.memory_space<smem>>, %arg5: memref<1x128xf32, #tpu.memory_space<vmem>>) attributes {dimension_semantics = [#tpu.dimension_semantics<parallel>], iteration_bounds = array<i64: 1>, scalar_prefetch = 0 : i64, scratch_operands = 0 : i64, tpu.core_type = #tpu.core_type<tc>, window_params = [{transform_indices = @transform_0, window_bounds = array<i64: 8, 128>}, {transform_indices = @transform_1, window_bounds = array<i64: 8, 128>}, {pipeline_mode = #tpu.pipeline_mode<synchronous>, transform_indices = @transform_2, window_bounds = array<i64: 6, 32>}, {transform_indices = @transform_3, window_bounds = array<i64: 1>}, {transform_indices = @transform_4, window_bounds = array<i64: 1, 128>}]} {
    %c0 = arith.constant 0 : index
    %c0_0 = arith.constant 0 : index
    %0 = vector.load %arg3[%c0, %c0_0] : memref<6x32xf32, #tpu.memory_space<vmem>>, vector<6x32xf32>
    %c0_1 = arith.constant 0 : index
    %c0_2 = arith.constant 0 : index
    %1 = vector.load %arg1[%c0_1, %c0_2] : memref<8x128xi32, #tpu.memory_space<vmem>>, vector<8x128xi32>
    %c0_3 = arith.constant 0 : index
    %c0_4 = arith.constant 0 : index
    %2 = vector.load %arg2[%c0_3, %c0_4] : memref<8x128xf32, #tpu.memory_space<vmem>>, vector<8x128xf32>
    %3 = tpu.iota {dimensions = array<i32: 0>} : vector<32x128xi32>
    %cst = arith.constant 0.000000e+00 : f32
    %4 = vector.broadcast %cst : f32 to vector<6x128xf32>
    %cst_5 = arith.constant 0.000000e+00 : f32
    %5 = vector.broadcast %cst_5 : f32 to vector<6x128xf32>
    %6 = vector.extract_strided_slice %1 {offsets = [0, 0], sizes = [1, 128], strides = [1, 1]} : vector<8x128xi32> to vector<1x128xi32>
    %7 = vector.broadcast %6 : vector<1x128xi32> to vector<32x128xi32>
    %8 = arith.cmpi eq, %3, %7 : vector<32x128xi32>
    %9 = arith.extui %8 : vector<32x128xi1> to vector<32x128xi32>
    %10 = arith.sitofp %9 : vector<32x128xi32> to vector<32x128xf32>
    %cst_6 = arith.constant dense<0.000000e+00> : vector<6x128xf32>
    %11 = tpu.matmul %0, %10, %cst_6 {dimension_numbers = #tpu.dot_dimension_numbers<[1], [0], [0], [1], [0, 0, 1, 1], [], []>} : vector<6x32xf32>, vector<32x128xf32>, vector<6x128xf32> -> vector<6x128xf32>
    %12 = vector.extract_strided_slice %2 {offsets = [0, 0], sizes = [1, 128], strides = [1, 1]} : vector<8x128xf32> to vector<1x128xf32>
    %13 = vector.broadcast %12 : vector<1x128xf32> to vector<6x128xf32>
    %14 = arith.mulf %11, %13 : vector<6x128xf32>
    %15 = arith.addf %4, %14 : vector<6x128xf32>
    %16 = arith.mulf %14, %14 : vector<6x128xf32>
    %17 = arith.addf %5, %16 : vector<6x128xf32>
    %18 = vector.extract_strided_slice %1 {offsets = [1, 0], sizes = [1, 128], strides = [1, 1]} : vector<8x128xi32> to vector<1x128xi32>
    %19 = vector.broadcast %18 : vector<1x128xi32> to vector<32x128xi32>
    %20 = arith.cmpi eq, %3, %19 : vector<32x128xi32>
    %21 = arith.extui %20 : vector<32x128xi1> to vector<32x128xi32>
    %22 = arith.sitofp %21 : vector<32x128xi32> to vector<32x128xf32>
    %cst_7 = arith.constant dense<0.000000e+00> : vector<6x128xf32>
    %23 = tpu.matmul %0, %22, %cst_7 {dimension_numbers = #tpu.dot_dimension_numbers<[1], [0], [0], [1], [0, 0, 1, 1], [], []>} : vector<6x32xf32>, vector<32x128xf32>, vector<6x128xf32> -> vector<6x128xf32>
    %24 = vector.extract_strided_slice %2 {offsets = [1, 0], sizes = [1, 128], strides = [1, 1]} : vector<8x128xf32> to vector<1x128xf32>
    %25 = vector.broadcast %24 : vector<1x128xf32> to vector<6x128xf32>
    %26 = arith.mulf %23, %25 : vector<6x128xf32>
    %27 = arith.addf %15, %26 : vector<6x128xf32>
    %28 = arith.mulf %26, %26 : vector<6x128xf32>
    %29 = arith.addf %17, %28 : vector<6x128xf32>
    %30 = vector.extract_strided_slice %1 {offsets = [2, 0], sizes = [1, 128], strides = [1, 1]} : vector<8x128xi32> to vector<1x128xi32>
    %31 = vector.broadcast %30 : vector<1x128xi32> to vector<32x128xi32>
    %32 = arith.cmpi eq, %3, %31 : vector<32x128xi32>
    %33 = arith.extui %32 : vector<32x128xi1> to vector<32x128xi32>
    %34 = arith.sitofp %33 : vector<32x128xi32> to vector<32x128xf32>
    %cst_8 = arith.constant dense<0.000000e+00> : vector<6x128xf32>
    %35 = tpu.matmul %0, %34, %cst_8 {dimension_numbers = #tpu.dot_dimension_numbers<[1], [0], [0], [1], [0, 0, 1, 1], [], []>} : vector<6x32xf32>, vector<32x128xf32>, vector<6x128xf32> -> vector<6x128xf32>
    %36 = vector.extract_strided_slice %2 {offsets = [2, 0], sizes = [1, 128], strides = [1, 1]} : vector<8x128xf32> to vector<1x128xf32>
    %37 = vector.broadcast %36 : vector<1x128xf32> to vector<6x128xf32>
    %38 = arith.mulf %35, %37 : vector<6x128xf32>
    %39 = arith.addf %27, %38 : vector<6x128xf32>
    %40 = arith.mulf %38, %38 : vector<6x128xf32>
    %41 = arith.addf %29, %40 : vector<6x128xf32>
    %42 = vector.extract_strided_slice %1 {offsets = [3, 0], sizes = [1, 128], strides = [1, 1]} : vector<8x128xi32> to vector<1x128xi32>
    %43 = vector.broadcast %42 : vector<1x128xi32> to vector<32x128xi32>
    %44 = arith.cmpi eq, %3, %43 : vector<32x128xi32>
    %45 = arith.extui %44 : vector<32x128xi1> to vector<32x128xi32>
    %46 = arith.sitofp %45 : vector<32x128xi32> to vector<32x128xf32>
    %cst_9 = arith.constant dense<0.000000e+00> : vector<6x128xf32>
    %47 = tpu.matmul %0, %46, %cst_9 {dimension_numbers = #tpu.dot_dimension_numbers<[1], [0], [0], [1], [0, 0, 1, 1], [], []>} : vector<6x32xf32>, vector<32x128xf32>, vector<6x128xf32> -> vector<6x128xf32>
    %48 = vector.extract_strided_slice %2 {offsets = [3, 0], sizes = [1, 128], strides = [1, 1]} : vector<8x128xf32> to vector<1x128xf32>
    %49 = vector.broadcast %48 : vector<1x128xf32> to vector<6x128xf32>
    %50 = arith.mulf %47, %49 : vector<6x128xf32>
    %51 = arith.addf %39, %50 : vector<6x128xf32>
    %52 = arith.mulf %50, %50 : vector<6x128xf32>
    %53 = arith.addf %41, %52 : vector<6x128xf32>
    %54 = vector.extract_strided_slice %1 {offsets = [4, 0], sizes = [1, 128], strides = [1, 1]} : vector<8x128xi32> to vector<1x128xi32>
    %55 = vector.broadcast %54 : vector<1x128xi32> to vector<32x128xi32>
    %56 = arith.cmpi eq, %3, %55 : vector<32x128xi32>
    %57 = arith.extui %56 : vector<32x128xi1> to vector<32x128xi32>
    %58 = arith.sitofp %57 : vector<32x128xi32> to vector<32x128xf32>
    %cst_10 = arith.constant dense<0.000000e+00> : vector<6x128xf32>
    %59 = tpu.matmul %0, %58, %cst_10 {dimension_numbers = #tpu.dot_dimension_numbers<[1], [0], [0], [1], [0, 0, 1, 1], [], []>} : vector<6x32xf32>, vector<32x128xf32>, vector<6x128xf32> -> vector<6x128xf32>
    %60 = vector.extract_strided_slice %2 {offsets = [4, 0], sizes = [1, 128], strides = [1, 1]} : vector<8x128xf32> to vector<1x128xf32>
    %61 = vector.broadcast %60 : vector<1x128xf32> to vector<6x128xf32>
    %62 = arith.mulf %59, %61 : vector<6x128xf32>
    %63 = arith.addf %51, %62 : vector<6x128xf32>
    %64 = arith.mulf %62, %62 : vector<6x128xf32>
    %65 = arith.addf %53, %64 : vector<6x128xf32>
    %66 = vector.extract_strided_slice %1 {offsets = [5, 0], sizes = [1, 128], strides = [1, 1]} : vector<8x128xi32> to vector<1x128xi32>
    %67 = vector.broadcast %66 : vector<1x128xi32> to vector<32x128xi32>
    %68 = arith.cmpi eq, %3, %67 : vector<32x128xi32>
    %69 = arith.extui %68 : vector<32x128xi1> to vector<32x128xi32>
    %70 = arith.sitofp %69 : vector<32x128xi32> to vector<32x128xf32>
    %cst_11 = arith.constant dense<0.000000e+00> : vector<6x128xf32>
    %71 = tpu.matmul %0, %70, %cst_11 {dimension_numbers = #tpu.dot_dimension_numbers<[1], [0], [0], [1], [0, 0, 1, 1], [], []>} : vector<6x32xf32>, vector<32x128xf32>, vector<6x128xf32> -> vector<6x128xf32>
    %72 = vector.extract_strided_slice %2 {offsets = [5, 0], sizes = [1, 128], strides = [1, 1]} : vector<8x128xf32> to vector<1x128xf32>
    %73 = vector.broadcast %72 : vector<1x128xf32> to vector<6x128xf32>
    %74 = arith.mulf %71, %73 : vector<6x128xf32>
    %75 = arith.addf %63, %74 : vector<6x128xf32>
    %76 = arith.mulf %74, %74 : vector<6x128xf32>
    %77 = arith.addf %65, %76 : vector<6x128xf32>
    %78 = vector.extract_strided_slice %1 {offsets = [6, 0], sizes = [1, 128], strides = [1, 1]} : vector<8x128xi32> to vector<1x128xi32>
    %79 = vector.broadcast %78 : vector<1x128xi32> to vector<32x128xi32>
    %80 = arith.cmpi eq, %3, %79 : vector<32x128xi32>
    %81 = arith.extui %80 : vector<32x128xi1> to vector<32x128xi32>
    %82 = arith.sitofp %81 : vector<32x128xi32> to vector<32x128xf32>
    %cst_12 = arith.constant dense<0.000000e+00> : vector<6x128xf32>
    %83 = tpu.matmul %0, %82, %cst_12 {dimension_numbers = #tpu.dot_dimension_numbers<[1], [0], [0], [1], [0, 0, 1, 1], [], []>} : vector<6x32xf32>, vector<32x128xf32>, vector<6x128xf32> -> vector<6x128xf32>
    %84 = vector.extract_strided_slice %2 {offsets = [6, 0], sizes = [1, 128], strides = [1, 1]} : vector<8x128xf32> to vector<1x128xf32>
    %85 = vector.broadcast %84 : vector<1x128xf32> to vector<6x128xf32>
    %86 = arith.mulf %83, %85 : vector<6x128xf32>
    %87 = arith.addf %75, %86 : vector<6x128xf32>
    %88 = arith.mulf %86, %86 : vector<6x128xf32>
    %89 = arith.addf %77, %88 : vector<6x128xf32>
    %90 = vector.extract_strided_slice %1 {offsets = [7, 0], sizes = [1, 128], strides = [1, 1]} : vector<8x128xi32> to vector<1x128xi32>
    %91 = vector.broadcast %90 : vector<1x128xi32> to vector<32x128xi32>
    %92 = arith.cmpi eq, %3, %91 : vector<32x128xi32>
    %93 = arith.extui %92 : vector<32x128xi1> to vector<32x128xi32>
    %94 = arith.sitofp %93 : vector<32x128xi32> to vector<32x128xf32>
    %cst_13 = arith.constant dense<0.000000e+00> : vector<6x128xf32>
    %95 = tpu.matmul %0, %94, %cst_13 {dimension_numbers = #tpu.dot_dimension_numbers<[1], [0], [0], [1], [0, 0, 1, 1], [], []>} : vector<6x32xf32>, vector<32x128xf32>, vector<6x128xf32> -> vector<6x128xf32>
    %96 = vector.extract_strided_slice %2 {offsets = [7, 0], sizes = [1, 128], strides = [1, 1]} : vector<8x128xf32> to vector<1x128xf32>
    %97 = vector.broadcast %96 : vector<1x128xf32> to vector<6x128xf32>
    %98 = arith.mulf %95, %97 : vector<6x128xf32>
    %99 = arith.addf %87, %98 : vector<6x128xf32>
    %100 = arith.mulf %98, %98 : vector<6x128xf32>
    %101 = arith.addf %89, %100 : vector<6x128xf32>
    %102 = vector.extract_strided_slice %99 {offsets = [0, 0], sizes = [5, 128], strides = [1, 1]} : vector<6x128xf32> to vector<5x128xf32>
    %103 = vector.extract_strided_slice %101 {offsets = [0, 0], sizes = [5, 128], strides = [1, 1]} : vector<6x128xf32> to vector<5x128xf32>
    %104 = arith.mulf %102, %102 : vector<5x128xf32>
    %105 = arith.subf %104, %103 : vector<5x128xf32>
    %cst_14 = arith.constant dense<0.000000e+00> : vector<128xf32>
    %106 = vector.multi_reduction <add>, %105, %cst_14 [0] : vector<5x128xf32> to vector<128xf32>
    %107 = vector.shape_cast %106 : vector<128xf32> to vector<1x128xf32>
    %cst_15 = arith.constant 5.000000e-01 : f32
    %108 = vector.broadcast %cst_15 : f32 to vector<1x128xf32>
    %109 = arith.mulf %108, %107 : vector<1x128xf32>
    %110 = vector.extract_strided_slice %99 {offsets = [5, 0], sizes = [1, 128], strides = [1, 1]} : vector<6x128xf32> to vector<1x128xf32>
    %c0_16 = arith.constant 0 : index
    %111 = memref.load %arg4[%c0_16] : memref<1xf32, #tpu.memory_space<smem>>
    %112 = vector.broadcast %111 : f32 to vector<1x128xf32>
    %113 = arith.addf %112, %110 : vector<1x128xf32>
    %114 = arith.addf %113, %109 : vector<1x128xf32>
    %115 = arith.negf %114 : vector<1x128xf32>
    %116 = math.exp %115 : vector<1x128xf32>
    %cst_17 = arith.constant 1.000000e+00 : f32
    %117 = vector.broadcast %cst_17 : f32 to vector<1x128xf32>
    %118 = arith.addf %117, %116 : vector<1x128xf32>
    %119 = arith.divf %117, %118 : vector<1x128xf32>
    %c0_18 = arith.constant 0 : index
    %c0_19 = arith.constant 0 : index
    %120 = vector.load %arg5[%c0_18, %c0_19] : memref<1x128xf32, #tpu.memory_space<vmem>>, vector<1x128xf32>
    tpu.vector_store %arg5[%c0_18, %c0_19], %119 {strides = array<i32>} : memref<1x128xf32, #tpu.memory_space<vmem>>, vector<1x128xf32>,
    return
  }
  func.func @transform_0(%arg0: i32) -> (i32, i32) {
    %c0_i32 = arith.constant 0 : i32
    %c0_i32_0 = arith.constant 0 : i32
    return %c0_i32, %arg0 : i32, i32
  }
  func.func @transform_1(%arg0: i32) -> (i32, i32) {
    %c0_i32 = arith.constant 0 : i32
    %c0_i32_0 = arith.constant 0 : i32
    return %c0_i32, %arg0 : i32, i32
  }
  func.func @transform_2(%arg0: i32) -> (i32, i32) {
    %c0_i32 = arith.constant 0 : i32
    %c0_i32_0 = arith.constant 0 : i32
    %c0_i32_1 = arith.constant 0 : i32
    return %c0_i32, %c0_i32_0 : i32, i32
  }
  func.func @transform_3(%arg0: i32) -> i32 {
    %c0_i32 = arith.constant 0 : i32
    %c0_i32_0 = arith.constant 0 : i32
    return %c0_i32 : i32
  }
  func.func @transform_4(%arg0: i32) -> (i32, i32) {
    %c0_i32 = arith.constant 0 : i32
    %c0_i32_0 = arith.constant 0 : i32
    return %c0_i32, %arg0 : i32, i32
  }
}

</mosaic_0001>

<bundles_post_ra>
// kernel: tpu_custom_call.1
= control target key start
LH: loop header
LB: loop body
LE: loop exit
PB: predicated region body
PF: predicated region fallthrough
CT: control target
= control target key end

     0   :  { %10 = vsyncpa [#allocation4], 0  ;;  %s1392_s0 = inlined_call_operand.hbm [shape: s32[8,128], index: 0, kind: input, shape index: {}]   ;;  %s1393_s1 = inlined_call_operand.hbm [shape: f32[8,128], index: 1, kind: input, shape index: {}]   ;;  %s1394_s2 = inlined_call_operand.hbm [shape: f32[6,32], index: 2, kind: input, shape index: {}]   ;;  %s1395_s3 = inlined_call_operand.<no memory space> [shape: f32[1], index: 3, kind: input, shape index: {}]   ;;  %s1396_s4 = inlined_call_operand.hbm [shape: f32[1,128], index: 4, kind: output, shape index: {}]  }
   0x1   :  { %11 = vsyncpa [#allocation7], 0 }
   0x2   :  { %12 = vsyncpa [#allocation5], 0  ;;  %s1154_s15 = smov [#allocation6]   ;;  %s1155_s17 = smov [#allocation3]  }
   0x3   :  { %s29_s16 = sshll.u32 %s1154_s15, 4  ;;  %s19_s18 = sshll.u32 %s1155_s17, 4  ;;  %s30_s16 = int_to_ptr.vmem [resolvable:$true] %s29_s16  ;;  %s20_s18 = int_to_ptr.vmem [resolvable:$true] %s19_s18 }
   0x4   :  { %s1076_s19 = scalar_lea.vmem %s30_s16, 128  ;;  %p1081_p1 = scmp.lt.s32.totalorder %s30_s16, %s30_s16 }
   0x5   :  { %p1077_p0 = scmp.ne.s32.totalorder %s30_s16, %s1076_s19  ;;  %p1082_p2 = scmp.lt.s32.totalorder %s1076_s19, %s1076_s19 }
   0x7   :  { %p1083_p3 = por %p1082_p2, %p1081_p1 }
   0x9   :  { %p1084_p4 = pnand %p1083_p3, %p1077_p0 }
   0xb   :  { %1087 = shalt.err (!%p1084_p4)
}
   0xc   :  { %32 = dma.hbm_to_vmem [thread:$0]  %s1393_s1, 128, %s30_s16, [#allocation7]  }
   0xd   :  { %s1096_s22 = scalar_lea.vmem %s20_s18, 128  ;;  %p1101_p6 = scmp.lt.s32.totalorder %s20_s18, %s20_s18 }
   0xe   :  { %p1097_p5 = scmp.ne.s32.totalorder %s20_s18, %s1096_s22  ;;  %p1102_p7 = scmp.lt.s32.totalorder %s1096_s22, %s1096_s22 }
  0x10   :  { %p1103_p8 = por %p1102_p7, %p1101_p6 }
  0x12   :  { %p1104_p9 = pnand %p1103_p8, %p1097_p5 }
  0x14   :  { %1107 = shalt.err (!%p1104_p9)
}
  0x15   :  { %22 = dma.hbm_to_vmem [thread:$0]  %s1392_s0, 128, %s20_s18, [#allocation4]  }
  0x16   :  { %s1156_s25 = smov [#allocation8]  }
  0x17   :  { %s39_s26 = sshll.u32 %s1156_s25, 4  ;;  %s40_s26 = int_to_ptr.vmem [resolvable:$true] %s39_s26 }
  0x18   :  { %s1116_s27 = scalar_lea.vmem %s40_s26, 128  ;;  %p1121_p11 = scmp.lt.s32.totalorder %s40_s26, %s40_s26 }
  0x19   :  { %p1117_p10 = scmp.ne.s32.totalorder %s40_s26, %s1116_s27  ;;  %p1122_p12 = scmp.lt.s32.totalorder %s1116_s27, %s1116_s27 }
  0x1b   :  { %p1123_p13 = por %p1122_p12, %p1121_p11 }
  0x1d   :  { %p1124_p0 = pnand %p1123_p13, %p1117_p10 }
  0x1f   :  { %1127 = shalt.err (!%p1124_p0)
}
  0x20   :  { %42 = dma.hbm_to_vmem [thread:$0]  %s1394_s2, 128, %s40_s26, [#allocation7]  }
  0x21   :  { %1148 = dma.done.wait [#allocation4], 128  }
  0x22   :  { %1149 = vsyncadd [#allocation4], 4294967168 }
  0x23   :  { %1150 = dma.done.wait [#allocation7], 256  }
  0x24   :  { %1151 = vsyncadd [#allocation7], 4294967040  ;;  %v57_v0 = vlaneseq  ;;  %v1157_v1 = vmov 0.0   ;;  %vm1158_vm0 = vmmov 0   ;;  %v1211_v7 = vld [vmem:[#allocation3] sm:$0xff]  ;;  %v1159_v13 = vmov 1.0  }
  0x25   :  { %969 = vmatprep.subr.mxu0 %v1157_v1  ;;  %980 = vmatprep.subr.mxu1 %v1157_v1  ;;  %v1248_v16 = vld [vmem:[#allocation8] sm:$0x3f]  ;;  %vm78_vm9 = vcmask 261120   ;;  %v56_v29 = vld [vmem:[#allocation6] sm:$0xff]  ;;  %s1160_s29 = smov [#allocation9]  }
  0x26   :  { %v1197_v2 = vshrl.u32 %v57_v0, 7  ;;  %977 = vmatprep.mubr.msk.f32.mxu0 %vm1158_vm0, %v1157_v1  ;;  %988 = vmatprep.mubr.msk.f32.mxu1 %vm1158_vm0, %v1157_v1  ;;  %s846_s30 = sshll.u32 %s1160_s29, 4  ;;  %s847_s30 = int_to_ptr.vmem [resolvable:$true] %s846_s30 }
  0x27   :  { %s1128_s5 = scalar_lea.vmem %s847_s30, 16  ;;  %s1132_s6 = scalar_lea.vmem %s847_s30, 32 }
  0x28   :  { %v64_v3 = vsub.s32 0, %v1197_v2  ;;  %v162_v4 = vsub.s32 1, %v1197_v2  ;;  %v1206_v5 = vadd.s32 24, %v1197_v2  ;;  %v1209_v6 = vadd.s32 16, %v1197_v2  ;;  %p1129_p1 = scmp.ne.s32.totalorder %s847_s30, %s1128_s5  ;;  %p1133_p2 = scmp.lt.s32.totalorder %s847_s30, %s847_s30 }
  0x29   :  { %v1220_v10 = vadd.s32 8, %v1197_v2  ;;  %v256_v11 = vsub.s32 2, %v1197_v2  ;;  %v350_v12 = vsub.s32 3, %v1197_v2  ;;  %v444_v17 = vsub.s32 4, %v1197_v2  ;;  %p1134_p3 = scmp.lt.s32.totalorder %s1132_s6, %s1128_s5 }
  0x2a   :  { %v65_v8 = vrot.slane %v1211_v7, %v64_v3  ;;  %v163_v9 = vrot.slane %v1211_v7, %v162_v4  ;;  %v538_v18 = vsub.s32 5, %v1197_v2  ;;  %v632_v21 = vsub.s32 6, %v1197_v2 }
  0x2b   :  { %v257_v14 = vrot.slane %v1211_v7, %v256_v11  ;;  %v351_v15 = vrot.slane %v1211_v7, %v350_v12  ;;  %v445_v19 = vrot.slane %v1211_v7, %v444_v17  ;;  %v726_v22 = vsub.s32 7, %v1197_v2  ;;  %p1135_p4 = por %p1134_p3, %p1133_p2 }
  0x2c   :  { %vm69_vm1 = vcmp.eq.s32.totalorder %v1206_v5, %v65_v8  ;;  %vm167_vm2 = vcmp.eq.s32.totalorder %v1206_v5, %v163_v9  ;;  %vm68_vm3 = vcmp.eq.s32.totalorder %v1209_v6, %v65_v8  ;;  %vm166_vm4 = vcmp.eq.s32.totalorder %v1209_v6, %v163_v9 }
  0x2d   :  { %970 = vmatpush3.msk.msra.mxu0 %vm69_vm1, %v1159_v13  ;;  %981 = vmatpush3.msk.msra.mxu1 %vm167_vm2, %v1159_v13  ;;  %vm67_vm5 = vcmp.eq.s32.totalorder %v1220_v10, %v65_v8  ;;  %vm165_vm6 = vcmp.eq.s32.totalorder %v1220_v10, %v163_v9  ;;  %vm66_vm7 = vcmp.eq.s32.totalorder %v1197_v2, %v65_v8  ;;  %p1136_p5 = pnand %p1135_p4, %p1129_p1 }
  0x2e   :  { %971 = vmatprep.subr.mxu0 %v1157_v1  ;;  %982 = vmatprep.subr.mxu1 %v1157_v1  ;;  %vm164_vm8 = vcmp.eq.s32.totalorder %v1197_v2, %v163_v9  ;;  %vm261_vm10 = vcmp.eq.s32.totalorder %v1206_v5, %v257_v14  ;;  %vm355_vm11 = vcmp.eq.s32.totalorder %v1206_v5, %v351_v15 }
  0x2f   :  { %972 = vmatpush3.msk.msra.mxu0 %vm68_vm3, %v1159_v13  ;;  %983 = vmatpush3.msk.msra.mxu1 %vm166_vm4, %v1159_v13  ;;  %vm260_vm12 = vcmp.eq.s32.totalorder %v1209_v6, %v257_v14  ;;  %vm354_vm13 = vcmp.eq.s32.totalorder %v1209_v6, %v351_v15  ;;  %vm259_vm14 = vcmp.eq.s32.totalorder %v1220_v10, %v257_v14 }
  0x30   :  { %973 = vmatprep.subr.mxu0 %v1157_v1  ;;  %984 = vmatprep.subr.mxu1 %v1157_v1  ;;  %vm353_vm15 = vcmp.eq.s32.totalorder %v1220_v10, %v351_v15  ;;  %vm258_vm1 = vcmp.eq.s32.totalorder %v1197_v2, %v257_v14  ;;  %v539_v20 = vrot.slane %v1211_v7, %v538_v18 }
  0x31   :  { %974 = vmatpush3.msk.msra.mxu0 %vm67_vm5, %v1159_v13  ;;  %985 = vmatpush3.msk.msra.mxu1 %vm165_vm6, %v1159_v13  ;;  %vm352_vm2 = vcmp.eq.s32.totalorder %v1197_v2, %v351_v15  ;;  %vm449_vm3 = vcmp.eq.s32.totalorder %v1206_v5, %v445_v19  ;;  %vm448_vm5 = vcmp.eq.s32.totalorder %v1209_v6, %v445_v19 }
  0x32   :  { %975 = vmatprep.subr.mxu0 %v1157_v1  ;;  %986 = vmatprep.subr.mxu1 %v1157_v1  ;;  %vm543_vm4 = vcmp.eq.s32.totalorder %v1206_v5, %v539_v20  ;;  %vm542_vm6 = vcmp.eq.s32.totalorder %v1209_v6, %v539_v20  ;;  %v633_v23 = vrot.slane %v1211_v7, %v632_v21 }
  0x33   :  { %976 = vmatpush3.msk.msra.mxu0 %vm66_vm7, %v1159_v13  ;;  %987 = vmatpush3.msk.msra.mxu1 %vm164_vm8, %v1159_v13  ;;  %vm447_vm7 = vcmp.eq.s32.totalorder %v1220_v10, %v445_v19  ;;  %vm541_vm8 = vcmp.eq.s32.totalorder %v1220_v10, %v539_v20  ;;  %v727_v24 = vrot.slane %v1211_v7, %v726_v22 }
  0x34   :  { %978 = vmatmul.mubr.msk.f32.vlgmr.msra.gmra.mxu0 %vm78_vm9, %v1248_v16  ;;  %991 = vmatprep.subr.mxu0 %v1157_v1  ;;  %v155_v30 = vrot.slane %v56_v29, %v64_v3  ;;  %v249_v31 = vrot.slane %v56_v29, %v162_v4  ;;  %v343_v33 = vrot.slane %v56_v29, %v256_v11 }
  0x35   :  { %1002 = vmatprep.subr.mxu1 %v1157_v1  ;;  %989 = vmatmul.mubr.msk.f32.vlgmr.msra.gmra.mxu1 %vm78_vm9, %v1248_v16  ;;  %v437_v40 = vrot.slane %v56_v29, %v350_v12  ;;  %v531_v43 = vrot.slane %v56_v29, %v444_v17  ;;  %v625_v52 = vrot.slane %v56_v29, %v538_v18 }
  0x36   :  { %992 = vmatpush3.msk.msra.mxu0 %vm261_vm10, %v1159_v13  ;;  %1003 = vmatpush3.msk.msra.mxu1 %vm355_vm11, %v1159_v13  ;;  %vm446_vm10 = vcmp.eq.s32.totalorder %v1197_v2, %v445_v19  ;;  %vm540_vm11 = vcmp.eq.s32.totalorder %v1197_v2, %v539_v20  ;;  %v719_v62 = vrot.slane %v56_v29, %v632_v21 }
  0x37   :  { %993 = vmatprep.subr.mxu0 %v1157_v1  ;;  %1004 = vmatprep.subr.mxu1 %v1157_v1  ;;  %v813_v63 = vrot.slane %v56_v29, %v726_v22 }
  0x38   :  { %994 = vmatpush3.msk.msra.mxu0 %vm260_vm12, %v1159_v13  ;;  %1005 = vmatpush3.msk.msra.mxu1 %vm354_vm13, %v1159_v13  ;;  %vm637_vm12 = vcmp.eq.s32.totalorder %v1206_v5, %v633_v23  ;;  %vm731_vm13 = vcmp.eq.s32.totalorder %v1206_v5, %v727_v24 }
  0x39   :  { %995 = vmatprep.subr.mxu0 %v1157_v1  ;;  %1006 = vmatprep.subr.mxu1 %v1157_v1 }
  0x3a   :  { %996 = vmatpush3.msk.msra.mxu0 %vm259_vm14, %v1159_v13  ;;  %1007 = vmatpush3.msk.msra.mxu1 %vm353_vm15, %v1159_v13  ;;  %vm636_vm14 = vcmp.eq.s32.totalorder %v1209_v6, %v633_v23  ;;  %vm730_vm15 = vcmp.eq.s32.totalorder %v1209_v6, %v727_v24 }
  0x3b   :  { %997 = vmatprep.subr.mxu0 %v1157_v1  ;;  %1008 = vmatprep.subr.mxu1 %v1157_v1 }
  0x3c   :  { %998 = vmatpush3.msk.msra.mxu0 %vm258_vm1, %v1159_v13  ;;  %999 = vmatprep.mubr.msk.f32.mxu0 %vm1158_vm0, %v1157_v1  ;;  %vm635_vm1 = vcmp.eq.s32.totalorder %v1220_v10, %v633_v23 }
  0x3d   :  { %1009 = vmatpush3.msk.msra.mxu1 %vm352_vm2, %v1159_v13  ;;  %1000 = vmatmul.mubr.msk.f32.vlgmr.msra.gmra.mxu0 %vm78_vm9, %v1248_v16  ;;  %vm729_vm2 = vcmp.eq.s32.totalorder %v1220_v10, %v727_v24 }
  0x3e   :  { %1010 = vmatprep.mubr.msk.f32.mxu1 %vm1158_vm0, %v1157_v1  ;;  %1013 = vmatprep.subr.mxu0 %v1157_v1 }
  0x3f   :  { %1024 = vmatprep.subr.mxu1 %v1157_v1  ;;  %1011 = vmatmul.mubr.msk.f32.vlgmr.msra.gmra.mxu1 %vm78_vm9, %v1248_v16 }
  0x40   :  { %1014 = vmatpush3.msk.msra.mxu0 %vm449_vm3, %v1159_v13  ;;  %1025 = vmatpush3.msk.msra.mxu1 %vm543_vm4, %v1159_v13  ;;  %vm634_vm3 = vcmp.eq.s32.totalorder %v1197_v2, %v633_v23  ;;  %vm728_vm4 = vcmp.eq.s32.totalorder %v1197_v2, %v727_v24  ;;  %v830_v24 = vstv %s1395_s3 }
  0x41   :  { %1015 = vmatprep.subr.mxu0 %v1157_v1  ;;  %1026 = vmatprep.subr.mxu1 %v1157_v1 }
  0x42   :  { %1016 = vmatpush3.msk.msra.mxu0 %vm448_vm5, %v1159_v13  ;;  %1027 = vmatpush3.msk.msra.mxu1 %vm542_vm6, %v1159_v13 }
  0x43   :  { %1017 = vmatprep.subr.mxu0 %v1157_v1  ;;  %1028 = vmatprep.subr.mxu1 %v1157_v1 }
  0x44   :  { %1018 = vmatpush3.msk.msra.mxu0 %vm447_vm7, %v1159_v13  ;;  %1029 = vmatpush3.msk.msra.mxu1 %vm541_vm8, %v1159_v13 }
  0x45   :  { %1019 = vmatprep.subr.mxu0 %v1157_v1  ;;  %1030 = vmatprep.subr.mxu1 %v1157_v1 }
  0x46   :  { %1020 = vmatpush3.msk.msra.mxu0 %vm446_vm10, %v1159_v13  ;;  %1021 = vmatprep.mubr.msk.f32.mxu0 %vm1158_vm0, %v1157_v1 }
  0x47   :  { %1031 = vmatpush3.msk.msra.mxu1 %vm540_vm11, %v1159_v13  ;;  %1022 = vmatmul.mubr.msk.f32.vlgmr.msra.gmra.mxu0 %vm78_vm9, %v1248_v16 }
  0x48   :  { %1032 = vmatprep.mubr.msk.f32.mxu1 %vm1158_vm0, %v1157_v1  ;;  %1035 = vmatprep.subr.mxu0 %v1157_v1 }
  0x49   :  { %1046 = vmatprep.subr.mxu1 %v1157_v1  ;;  %1033 = vmatmul.mubr.msk.f32.vlgmr.msra.gmra.mxu1 %vm78_vm9, %v1248_v16 }
  0x4a   :  { %1036 = vmatpush3.msk.msra.mxu0 %vm637_vm12, %v1159_v13  ;;  %1047 = vmatpush3.msk.msra.mxu1 %vm731_vm13, %v1159_v13 }
  0x4b   :  { %1037 = vmatprep.subr.mxu0 %v1157_v1  ;;  %1048 = vmatprep.subr.mxu1 %v1157_v1 }
  0x4c   :  { %1038 = vmatpush3.msk.msra.mxu0 %vm636_vm14, %v1159_v13  ;;  %1049 = vmatpush3.msk.msra.mxu1 %vm730_vm15, %v1159_v13 }
  0x4d   :  { %1039 = vmatprep.subr.mxu0 %v1157_v1  ;;  %1050 = vmatprep.subr.mxu1 %v1157_v1 }
  0x4e   :  { %1040 = vmatpush3.msk.msra.mxu0 %vm635_vm1, %v1159_v13  ;;  %1051 = vmatpush3.msk.msra.mxu1 %vm729_vm2, %v1159_v13 }
  0x4f   :  { %1041 = vmatprep.subr.mxu0 %v1157_v1  ;;  %1052 = vmatprep.subr.mxu1 %v1157_v1 }
  0x50   :  { %1042 = vmatpush3.msk.msra.mxu0 %vm634_vm3, %v1159_v13  ;;  %1043 = vmatprep.mubr.msk.f32.mxu0 %vm1158_vm0, %v1157_v1 }
  0x51   :  { %1053 = vmatpush3.msk.msra.mxu1 %vm728_vm4, %v1159_v13  ;;  %1054 = vmatprep.mubr.msk.f32.mxu1 %vm1158_vm0, %v1157_v1  ;;  %vm820_vm0 = vcmask 1044480  }
  0x52   :  { %1044 = vmatmul.mubr.msk.f32.vlgmr.msra.gmra.mxu0 %vm78_vm9, %v1248_v16  ;;  %1055 = vmatmul.mubr.msk.f32.vlgmr.msra.gmra.mxu1 %vm78_vm9, %v1248_v16 }
  0xf4   :  { %v148_v25 = vpop.f32.mrf.mxu0 }
  0xf5   :  { %v242_v26 = vpop.f32.mrf.mxu1  ;;  %v156_v36 = vmul.f32 %v155_v30, %v148_v25 }
  0xf6   :  { %v979_v27 = vpop.f32.mrf.mxu0  ;;  %v250_v37 = vmul.f32 %v249_v31, %v242_v26 }
  0xf7   :  { %v990_v28 = vpop.f32.mrf.mxu1  ;;  %v158_v41 = vmul.f32 %v156_v36, %v156_v36 }
  0xf8   :  { %v252_v42 = vmul.f32 %v250_v37, %v250_v37  ;;  %v251_v44 = vadd.f32 %v250_v37, %v156_v36 }
  0xfa   :  { %v253_v48 = vadd.f32 %v252_v42, %v158_v41 }
  0xfd   :  { %v336_v32 = vpop.f32.mrf.mxu0 }
  0xfe   :  { %v344_v39 = vmul.f32 %v343_v33, %v336_v32 }
  0xff   :  { %v430_v34 = vpop.f32.mrf.mxu1  ;;  %v1001_v35 = vpop.f32.mrf.mxu0 }
 0x100   :  { %v346_v45 = vmul.f32 %v344_v39, %v344_v39  ;;  %v438_v46 = vmul.f32 %v437_v40, %v430_v34  ;;  %v345_v49 = vadd.f32 %v344_v39, %v251_v44 }
 0x101   :  { %v1012_v38 = vpop.f32.mrf.mxu1 }
 0x102   :  { %v347_v54 = vadd.f32 %v346_v45, %v253_v48  ;;  %v440_v55 = vmul.f32 %v438_v46, %v438_v46  ;;  %v439_v57 = vadd.f32 %v438_v46, %v345_v49 }
 0x104   :  { %v441_v60 = vadd.f32 %v440_v55, %v347_v54 }
 0x107   :  { %v524_v47 = vpop.f32.mrf.mxu0 }
 0x108   :  { %v532_v50 = vmul.f32 %v531_v43, %v524_v47 }
 0x109   :  { %v618_v51 = vpop.f32.mrf.mxu1  ;;  %v1023_v53 = vpop.f32.mrf.mxu0 }
 0x10a   :  { %v534_v58 = vmul.f32 %v532_v50, %v532_v50  ;;  %v626_v59 = vmul.f32 %v625_v52, %v618_v51  ;;  %v533_v61 = vadd.f32 %v532_v50, %v439_v57 }
 0x10b   :  { %v1034_v56 = vpop.f32.mrf.mxu1 }
 0x10c   :  { %v535_v0 = vadd.f32 %v534_v58, %v441_v60  ;;  %v628_v1 = vmul.f32 %v626_v59, %v626_v59  ;;  %v627_v5 = vadd.f32 %v626_v59, %v533_v61 }
 0x10e   :  { %v629_v10 = vadd.f32 %v628_v1, %v535_v0 }
 0x112   :  { %v712_v3 = vpop.f32.mrf.mxu0  ;;  %v806_v4 = vpop.f32.mrf.mxu1 }
 0x113   :  { %v720_v6 = vmul.f32 %v719_v62, %v712_v3  ;;  %v814_v7 = vmul.f32 %v813_v63, %v806_v4 }
 0x114   :  { %v1045_v8 = vpop.f32.mrf.mxu0  ;;  %v1056_v9 = vpop.f32.mrf.mxu1 }
 0x115   :  { %v721_v11 = vadd.f32 %v720_v6, %v627_v5  ;;  %v722_v12 = vmul.f32 %v720_v6, %v720_v6  ;;  %v816_v13 = vmul.f32 %v814_v7, %v814_v7 }
 0x117   :  { %v723_v14 = vadd.f32 %v722_v12, %v629_v10  ;;  %v815_v15 = vadd.f32 %v814_v7, %v721_v11 }
 0x119   :  { %v817_v16 = vadd.f32 %v816_v13, %v723_v14  ;;  %v818_v17 = vmul.f32 %v815_v15, %v815_v15  ;;  %v831_v27 = vadd.f32 %v830_v24, %v815_v15 }
 0x11b   :  { %v819_v2 = vsub.f32 %v818_v17, %v817_v16 }
 0x11d   :  { %v821_v18 = vsel %vm820_vm0, %v819_v2, 0.0 }
 0x11e   :  { %v822_v19 = vrot.slane %v821_v18, 4 }
 0x120   :  { %v823_v20 = vadd.f32 %v822_v19, %v821_v18 }
 0x122   :  { %v824_v21 = vrot.slane %v823_v20, 2 }
 0x124   :  { %v825_v22 = vadd.f32 %v824_v21, %v823_v20 }
 0x126   :  { %v826_v23 = vrot.slane %v825_v22, 1 }
 0x128   :  { %v827_v25 = vadd.f32 %v826_v23, %v825_v22 }
 0x12a   :  { %v828_v26 = vmul.f32 0.5, %v827_v25 }
 0x12c   :  { %v832_v28 = vadd.f32 %v831_v27, %v828_v26 }
 0x12e   :  { %v928_v29 = vmul.f32 -1.442695, %v832_v28 }
 0x130   :  { %1064 = vpow2.f32 %v928_v29 }
 0x13d   :  { %v1065_v30 = vpop.eup %1064 }
 0x13e   :  { %v836_v31 = vadd.f32 1.0, %v1065_v30 }
 0x140   :  { %1066 = vrcp.f32 %v836_v31 }
 0x14d   :  { %v1067_v32 = vpop.eup %1066 }
 0x14e   :  { %839 = vst [vmem:[#allocation9 - $0x5] sm:$0x20] %v1067_v32 }
 0x14f   :  { %1139 = shalt.err (!%p1136_p5)
}
 0x150   :  { %849 = dma.vmem_to_hbm [thread:$0]  %s847_s30, 16, %s1396_s4, [#allocation5]  }
 0x151   :  { %1152 = dma.done.wait [#allocation5], 16  }
 0x152   :  { %1153 = vsyncadd [#allocation5], 4294967280 }
 0x153   :  { %853 = vsyncpa [#allocation4], 1 }
 0x154   :  { %854 = vsyncpa [#allocation7], 1 }
 0x155   :  { %855 = vsyncpa [#allocation5], 1 }

</bundles_post_ra>
